<compile_context>
chip_gen: v7x
topology: tpu7x:2x2x1
jax: 0.10.0
libtpu: 0.0.40
codegen_flags: <defaults>
</compile_context>

<pallas_src>
import jax
import jax.numpy as jnp
from jax.experimental import pallas as pl
from jax.experimental.pallas import tpu as pltpu

C1, C2 = 24, 88
EPS = 1e-5
KTAPS = 9
K = KTAPS * C1          # 216 — contraction depth of the fused matmul
C2P = 128               # lane-dense (zero-padded) output channel dim


def _round_up(x, m):
    return (x + m - 1) // m * m


def fused_matmul_kernel(x_ref, w_ref, b_ref, o_ref):
    # x_ref : [TM, K]    im2col rows (f32 or bf16)
    # w_ref : [K, C2P]   fully folded weights (dw*s1*pw*s2), zero-padded columns
    # b_ref : [1, C2P]   fully folded bias ((b1 @ pw*s2) + b2), zero-padded
    # o_ref : [TM, C2P]  f32 output rows
    o_ref[...] = (
        jnp.dot(x_ref[...], w_ref[...], preferred_element_type=jnp.float32)
        + b_ref[...]
    )


def forward(x_nchw, params, compute_dtype=jnp.float32):
    N, C, H, W = x_nchw.shape
    assert C == C1
    x = jnp.transpose(x_nchw, (0, 2, 3, 1))               # NHWC
    xp = jnp.pad(x, ((0, 0), (1, 1), (1, 1), (0, 0)))     # pad=1
    Ho = (H + 2 - 3) // 2 + 1
    Wo = (W + 2 - 3) // 2 + 1
    R = N * Ho * Wo

    # Nine stride-2 taps of the padded input -> im2col rows [R, 9*C1] (glue).
    taps = [xp[:, kh:kh + 2 * Ho - 1:2, kw:kw + 2 * Wo - 1:2, :]
            for kh in range(3) for kw in range(3)]
    x9 = jnp.stack(taps, axis=3).reshape(R, K)             # [R, K]

    # Fold depthwise conv + BN1 + pointwise conv + BN2 into one weight/bias.
    inv1 = params["gamma1"] / jnp.sqrt(params["var1"] + EPS)        # [C1]
    b1 = params["beta1"] - params["mean1"] * inv1                   # [C1]
    inv2 = params["gamma2"] / jnp.sqrt(params["var2"] + EPS)        # [C2]
    b2 = params["beta2"] - params["mean2"] * inv2                   # [C2]

    dw9 = jnp.transpose(params["dw_w"].reshape(C1, KTAPS), (1, 0))  # [9, C1]
    pw = jnp.transpose(params["pw_w"].reshape(C2, C1), (1, 0))      # [C1, C2]
    pw_s2 = pw * inv2[None, :]                                      # [C1, C2]
    w_fused = (dw9 * inv1[None, :])[:, :, None] * pw_s2[None, :, :]  # [9,C1,C2]
    w_fused = w_fused.reshape(K, C2)                                # [K, C2]
    bias_fused = b1 @ pw_s2 + b2                                    # [C2]

    # Pad output channels to 128 lanes (unmasked stores), rows to the tile.
    w_pad = jnp.zeros((K, C2P), jnp.float32).at[:, :C2].set(w_fused)
    bias_pad = jnp.zeros((1, C2P), jnp.float32).at[0, :C2].set(bias_fused)

    TM = 256 if R >= 256 else _round_up(R, 16)
    Rp = _round_up(R, TM)
    x9p = jnp.pad(x9, ((0, Rp - R), (0, 0)))

    out = pl.pallas_call(
        fused_matmul_kernel,
        out_shape=jax.ShapeDtypeStruct((Rp, C2P), jnp.float32),
        grid=(Rp // TM,),
        in_specs=[
            pl.BlockSpec((TM, K), lambda i: (i, 0)),        # row-tiled input
            pl.BlockSpec((K, C2P), lambda i: (0, 0)),       # resident weights
            pl.BlockSpec((1, C2P), lambda i: (0, 0)),       # resident bias
        ],
        out_specs=pl.BlockSpec((TM, C2P), lambda i: (i, 0)),
        compiler_params=pltpu.CompilerParams(
            dimension_semantics=("parallel",)),
    )(x9p.astype(compute_dtype), w_pad.astype(compute_dtype), bias_pad)

    out = out[:R, :C2].reshape(N, Ho, Wo, C2)
    return jnp.transpose(out, (0, 3, 1, 2))                 # back to NCHW


def reference(x_nchw, params):
    """Pure-JAX reference (lax conv), eval-mode BN."""
    y = jax.lax.conv_general_dilated(
        x_nchw, params["dw_w"], window_strides=(2, 2),
        padding=((1, 1), (1, 1)), feature_group_count=C1,
        dimension_numbers=("NCHW", "OIHW", "NCHW"))
    inv1 = params["gamma1"] / jnp.sqrt(params["var1"] + EPS)
    y = (y - params["mean1"][None, :, None, None]) * inv1[None, :, None, None] \
        + params["beta1"][None, :, None, None]
    z = jax.lax.conv_general_dilated(
        y, params["pw_w"], window_strides=(1, 1), padding="VALID",
        dimension_numbers=("NCHW", "OIHW", "NCHW"))
    inv2 = params["gamma2"] / jnp.sqrt(params["var2"] + EPS)
    z = (z - params["mean2"][None, :, None, None]) * inv2[None, :, None, None] \
        + params["beta2"][None, :, None, None]
    return z


def init_params(key):
    ks = jax.random.split(key, 10)
    return {
        "dw_w": 0.1 * jax.random.normal(ks[0], (C1, 1, 3, 3), jnp.float32),
        "pw_w": 0.1 * jax.random.normal(ks[1], (C2, C1, 1, 1), jnp.float32),
        "gamma1": jax.random.uniform(ks[2], (C1,), jnp.float32, 0.8, 1.2),
        "beta1": 0.1 * jax.random.normal(ks[3], (C1,), jnp.float32),
        "mean1": 0.1 * jax.random.normal(ks[4], (C1,), jnp.float32),
        "var1": jax.random.uniform(ks[5], (C1,), jnp.float32, 0.5, 1.5),
        "gamma2": jax.random.uniform(ks[6], (C2,), jnp.float32, 0.8, 1.2),
        "beta2": 0.1 * jax.random.normal(ks[7], (C2,), jnp.float32),
        "mean2": 0.1 * jax.random.normal(ks[8], (C2,), jnp.float32),
        "var2": jax.random.uniform(ks[9], (C2,), jnp.float32, 0.5, 1.5),
    }


if __name__ == "__main__":
    root = jax.random.PRNGKey(0)
    k_x, k_p = jax.random.split(root)
    # small shapes consistent with the module: 24 input channels required
    x = jax.random.normal(k_x, (2, C1, 16, 16), jnp.float32)   # NCHW
    params = init_params(k_p)

    ref = reference(x, params)

    # f32 compute path: exact-parity check vs the lax reference.
    out = jax.block_until_ready(forward(x, params, jnp.float32))
    assert out.shape == ref.shape == (2, C2, 8, 8), out.shape
    assert bool(jnp.max(jnp.abs(out - ref)) < 1e-4), "f32 mismatch vs reference"

    # bf16 compute path (v6e/v7x fast path): f32 accumulation, looser tolerance
    # purely from bf16 rounding of inputs/weights.
    out_bf16 = jax.block_until_ready(forward(x, params, jnp.bfloat16))
    assert bool(jnp.max(jnp.abs(out_bf16 - ref)) < 1e-2), "bf16 mismatch vs reference"

    print("KERNEL_OK")
</pallas_src>

<mosaic_0001>
module attributes {stable_mosaic.version = 11 : i64} {
  func.func @fused_matmul_kernel(%arg0: i32, %arg1: memref<128x216xf32, #tpu.memory_space<vmem>>, %arg2: memref<216x128xf32, #tpu.memory_space<vmem>>, %arg3: memref<1x128xf32, #tpu.memory_space<vmem>>, %arg4: memref<128x128xf32, #tpu.memory_space<vmem>>) attributes {dimension_semantics = [#tpu.dimension_semantics<parallel>], iteration_bounds = array<i64: 1>, scalar_prefetch = 0 : i64, scratch_operands = 0 : i64, tpu.core_type = #tpu.core_type<tc>, window_params = [{transform_indices = @transform_0, window_bounds = array<i64: 128, 216>}, {pipeline_mode = #tpu.pipeline_mode<synchronous>, transform_indices = @transform_1, window_bounds = array<i64: 216, 128>}, {pipeline_mode = #tpu.pipeline_mode<synchronous>, transform_indices = @transform_2, window_bounds = array<i64: 1, 128>}, {transform_indices = @transform_3, window_bounds = array<i64: 128, 128>}]} {
    %c0 = arith.constant 0 : index
    %c0_0 = arith.constant 0 : index
    %0 = vector.load %arg1[%c0, %c0_0] : memref<128x216xf32, #tpu.memory_space<vmem>>, vector<128x216xf32>
    %c0_1 = arith.constant 0 : index
    %c0_2 = arith.constant 0 : index
    %1 = vector.load %arg2[%c0_1, %c0_2] : memref<216x128xf32, #tpu.memory_space<vmem>>, vector<216x128xf32>
    %cst = arith.constant dense<0.000000e+00> : vector<128x128xf32>
    %2 = tpu.matmul %0, %1, %cst {dimension_numbers = #tpu.dot_dimension_numbers<[1], [0], [0], [1], [0, 0, 1, 1], [], []>} : vector<128x216xf32>, vector<216x128xf32>, vector<128x128xf32> -> vector<128x128xf32>
    %c0_3 = arith.constant 0 : index
    %c0_4 = arith.constant 0 : index
    %3 = vector.load %arg3[%c0_3, %c0_4] : memref<1x128xf32, #tpu.memory_space<vmem>>, vector<1x128xf32>
    %4 = vector.broadcast %3 : vector<1x128xf32> to vector<128x128xf32>
    %5 = arith.addf %2, %4 : vector<128x128xf32>
    %c0_5 = arith.constant 0 : index
    %c0_6 = arith.constant 0 : index
    %6 = vector.load %arg4[%c0_5, %c0_6] : memref<128x128xf32, #tpu.memory_space<vmem>>, vector<128x128xf32>
    tpu.vector_store %arg4[%c0_5, %c0_6], %5 {strides = array<i32>} : memref<128x128xf32, #tpu.memory_space<vmem>>, vector<128x128xf32>,
    return
  }
  func.func @transform_0(%arg0: i32) -> (i32, i32) {
    %c0_i32 = arith.constant 0 : i32
    %c0_i32_0 = arith.constant 0 : i32
    return %arg0, %c0_i32 : i32, i32
  }
  func.func @transform_1(%arg0: i32) -> (i32, i32) {
    %c0_i32 = arith.constant 0 : i32
    %c0_i32_0 = arith.constant 0 : i32
    %c0_i32_1 = arith.constant 0 : i32
    return %c0_i32, %c0_i32_0 : i32, i32
  }
  func.func @transform_2(%arg0: i32) -> (i32, i32) {
    %c0_i32 = arith.constant 0 : i32
    %c0_i32_0 = arith.constant 0 : i32
    %c0_i32_1 = arith.constant 0 : i32
    return %c0_i32, %c0_i32_0 : i32, i32
  }
  func.func @transform_3(%arg0: i32) -> (i32, i32) {
    %c0_i32 = arith.constant 0 : i32
    %c0_i32_0 = arith.constant 0 : i32
    return %arg0, %c0_i32 : i32, i32
  }
}

</mosaic_0001>

<bundles_post_ra>
// kernel: tpu_custom_call.1
= control target key start
LH: loop header
LB: loop body
LE: loop exit
PB: predicated region body
PF: predicated region fallthrough
CT: control target
= control target key end

     0   :  { %v420_v3 = vmov 0.0|0.0   ;;  %vm81_vm0 = vcmask 719872   ;;  %s697_s0 = inlined_call_operand.vmem [shape: f32[128,216], index: 0, kind: input, shape index: {}]   ;;  %s698_s1 = inlined_call_operand.vmem [shape: f32[216,128], index: 1, kind: input, shape index: {}]   ;;  %s699_s2 = inlined_call_operand.vmem [shape: f32[1,128], index: 2, kind: input, shape index: {}]   ;;  %s700_s3 = inlined_call_operand.hbm [shape: f32[128,128], index: 3, kind: output, shape index: {}]  }
   0x1   :  { %v47_v0 = vld [vmem:[%s698_s1] sm:$0xff]  ;;  %v48_v1 = vld [vmem:[%s698_s1 + $0x8] sm:$0xff]  ;;  %v49_v2 = vld [vmem:[%s698_s1 + $0x10] sm:$0xff]  ;;  %324 = vmatprep.subr.bf16.mxu0 %v420_v3  ;;  %363 = vmatprep.subr.bf16.mxu1 %v420_v3 }
   0x2   :  { %v325_v4 = vpack.c.bf16 %v48_v1, %v47_v0  ;;  %v50_v5 = vld [vmem:[%s698_s1 + $0x18] sm:$0xff]  ;;  %v51_v7 = vld [vmem:[%s698_s1 + $0x20] sm:$0xff]  ;;  %v52_v8 = vld [vmem:[%s698_s1 + $0x28] sm:$0xff] }
   0x3   :  { %v328_v6 = vpack.c.bf16 %v50_v5, %v49_v2  ;;  %v331_v9 = vpack.c.bf16 %v52_v8, %v51_v7  ;;  %v53_v10 = vld [vmem:[%s698_s1 + $0x30] sm:$0xff]  ;;  %v54_v11 = vld [vmem:[%s698_s1 + $0x38] sm:$0xff]  ;;  %v16_v12 = vld [vmem:[%s697_s0 + $0x8] sm:$0xff] }
   0x4   :  { %326 = vmatpush1.bf16.msra.mxu0 %v325_v4  ;;  %377 = vmatpush1.bf16.msra.mxu1 %v325_v4  ;;  %v32_v13 = vld [vmem:[%s697_s0 + $0x88] sm:$0xff]  ;;  %v334_v14 = vpack.c.bf16 %v54_v11, %v53_v10  ;;  %v55_v15 = vld [vmem:[%s698_s1 + $0x40] sm:$0xff]  ;;  %v57_v18 = vld [vmem:[%s698_s1 + $0x50] sm:$0xff] }
   0x5   :  { %327 = vmatprep.subr.bf16.mxu0 %v420_v3  ;;  %364 = vmatprep.subr.bf16.mxu1 %v420_v3  ;;  %v56_v16 = vld [vmem:[%s698_s1 + $0x48] sm:$0xff]  ;;  %v58_v19 = vld [vmem:[%s698_s1 + $0x58] sm:$0xff]  ;;  %v59_v21 = vld [vmem:[%s698_s1 + $0x60] sm:$0xff] }
   0x6   :  { %308 = vmatprep.mubr.msk.f32.mxu0 %vm81_vm0, %v16_v12  ;;  %316 = vmatprep.mubr.msk.f32.mxu1 %vm81_vm0, %v32_v13  ;;  %v337_v17 = vpack.c.bf16 %v56_v16, %v55_v15  ;;  %v340_v20 = vpack.c.bf16 %v58_v19, %v57_v18  ;;  %v60_v22 = vld [vmem:[%s698_s1 + $0x68] sm:$0xff] }
   0x8   :  { %329 = vmatpush1.bf16.msra.mxu0 %v328_v6  ;;  %378 = vmatpush1.bf16.msra.mxu1 %v328_v6 }
   0x9   :  { %330 = vmatprep.subr.bf16.mxu0 %v420_v3  ;;  %365 = vmatprep.subr.bf16.mxu1 %v420_v3 }
   0xc   :  { %332 = vmatpush1.bf16.msra.mxu0 %v331_v9  ;;  %379 = vmatpush1.bf16.msra.mxu1 %v331_v9 }
   0xd   :  { %333 = vmatprep.subr.bf16.mxu0 %v420_v3  ;;  %366 = vmatprep.subr.bf16.mxu1 %v420_v3 }
  0x10   :  { %335 = vmatpush1.bf16.msra.mxu0 %v334_v14  ;;  %380 = vmatpush1.bf16.msra.mxu1 %v334_v14 }
  0x11   :  { %336 = vmatprep.subr.bf16.mxu0 %v420_v3  ;;  %367 = vmatprep.subr.bf16.mxu1 %v420_v3 }
  0x14   :  { %338 = vmatpush1.bf16.msra.mxu0 %v337_v17  ;;  %381 = vmatpush1.bf16.msra.mxu1 %v337_v17 }
  0x15   :  { %339 = vmatprep.subr.bf16.mxu0 %v420_v3  ;;  %368 = vmatprep.subr.bf16.mxu1 %v420_v3 }
  0x16   :  { %8 = vsyncpa [#allocation3], 0  ;;  %v343_v23 = vpack.c.bf16 %v60_v22, %v59_v21  ;;  %v61_v24 = vld [vmem:[%s698_s1 + $0x70] sm:$0xff]  ;;  %v62_v25 = vld [vmem:[%s698_s1 + $0x78] sm:$0xff]  ;;  %v421_v42 = vmov 0.0  }
  0x17   :  { %v346_v26 = vpack.c.bf16 %v62_v25, %v61_v24  ;;  %v63_v27 = vld [vmem:[%s698_s1 + $0x80] sm:$0xff]  ;;  %v64_v28 = vld [vmem:[%s698_s1 + $0x88] sm:$0xff]  ;;  %v65_v30 = vld [vmem:[%s698_s1 + $0x90] sm:$0xff] }
  0x18   :  { %341 = vmatpush1.bf16.msra.mxu0 %v340_v20  ;;  %382 = vmatpush1.bf16.msra.mxu1 %v340_v20  ;;  %v349_v29 = vpack.c.bf16 %v64_v28, %v63_v27  ;;  %v66_v31 = vld [vmem:[%s698_s1 + $0x98] sm:$0xff]  ;;  %v67_v33 = vld [vmem:[%s698_s1 + $0xa0] sm:$0xff]  ;;  %v68_v34 = vld [vmem:[%s698_s1 + $0xa8] sm:$0xff] }
  0x19   :  { %342 = vmatprep.subr.bf16.mxu0 %v420_v3  ;;  %369 = vmatprep.subr.bf16.mxu1 %v420_v3  ;;  %v352_v32 = vpack.c.bf16 %v66_v31, %v65_v30  ;;  %v355_v35 = vpack.c.bf16 %v68_v34, %v67_v33  ;;  %v69_v36 = vld [vmem:[%s698_s1 + $0xb0] sm:$0xff]  ;;  %v70_v37 = vld [vmem:[%s698_s1 + $0xb8] sm:$0xff]  ;;  %v71_v39 = vld [vmem:[%s698_s1 + $0xc0] sm:$0xff] }
  0x1a   :  { %v358_v38 = vpack.c.bf16 %v70_v37, %v69_v36  ;;  %v72_v40 = vld [vmem:[%s698_s1 + $0xc8] sm:$0xff]  ;;  %v73_v43 = vld [vmem:[%s698_s1 + $0xd0] sm:$0xff]  ;;  %v15_v44 = vld [vmem:[%s697_s0] sm:$0xff] }
  0x1b   :  { %v361_v41 = vpack.c.bf16 %v72_v40, %v71_v39  ;;  %v31_v45 = vld [vmem:[%s697_s0 + $0x80] sm:$0xff]  ;;  %v18_v46 = vld [vmem:[%s697_s0 + $0x18] sm:$0xff]  ;;  %v17_v48 = vld [vmem:[%s697_s0 + $0x10] sm:$0xff] }
  0x1c   :  { %344 = vmatpush1.bf16.msra.mxu0 %v343_v23  ;;  %383 = vmatpush1.bf16.msra.mxu1 %v343_v23  ;;  %v34_v47 = vld [vmem:[%s697_s0 + $0x98] sm:$0xff]  ;;  %v33_v49 = vld [vmem:[%s697_s0 + $0x90] sm:$0xff]  ;;  %v20_v50 = vld [vmem:[%s697_s0 + $0x28] sm:$0xff] }
  0x1d   :  { %345 = vmatprep.subr.bf16.mxu0 %v420_v3  ;;  %370 = vmatprep.subr.bf16.mxu1 %v420_v3  ;;  %v36_v51 = vld [vmem:[%s697_s0 + $0xa8] sm:$0xff]  ;;  %v19_v52 = vld [vmem:[%s697_s0 + $0x20] sm:$0xff]  ;;  %v22_v54 = vld [vmem:[%s697_s0 + $0x38] sm:$0xff] }
  0x1e   :  { %v35_v53 = vld [vmem:[%s697_s0 + $0xa0] sm:$0xff]  ;;  %v38_v55 = vld [vmem:[%s697_s0 + $0xb8] sm:$0xff]  ;;  %v21_v56 = vld [vmem:[%s697_s0 + $0x30] sm:$0xff] }
  0x1f   :  { %v37_v57 = vld [vmem:[%s697_s0 + $0xb0] sm:$0xff]  ;;  %v24_v58 = vld [vmem:[%s697_s0 + $0x48] sm:$0xff]  ;;  %v23_v60 = vld [vmem:[%s697_s0 + $0x40] sm:$0xff] }
  0x20   :  { %347 = vmatpush1.bf16.msra.mxu0 %v346_v26  ;;  %384 = vmatpush1.bf16.msra.mxu1 %v346_v26  ;;  %v40_v59 = vld [vmem:[%s697_s0 + $0xc8] sm:$0xff]  ;;  %v39_v61 = vld [vmem:[%s697_s0 + $0xc0] sm:$0xff]  ;;  %v26_v62 = vld [vmem:[%s697_s0 + $0x58] sm:$0xff] }
  0x21   :  { %348 = vmatprep.subr.bf16.mxu0 %v420_v3  ;;  %371 = vmatprep.subr.bf16.mxu1 %v420_v3  ;;  %v42_v63 = vld [vmem:[%s697_s0 + $0xd8] sm:$0xff]  ;;  %v25_v0 = vld [vmem:[%s697_s0 + $0x50] sm:$0xff]  ;;  %v28_v2 = vld [vmem:[%s697_s0 + $0x68] sm:$0xff] }
  0x22   :  { %v41_v1 = vld [vmem:[%s697_s0 + $0xd0] sm:$0xff]  ;;  %v27_v4 = vld [vmem:[%s697_s0 + $0x60] sm:$0xff]  ;;  %v30_v6 = vld [vmem:[%s697_s0 + $0x78] sm:$0xff] }
  0x23   :  { %v43_v5 = vld [vmem:[%s697_s0 + $0xe0] sm:$0xff]  ;;  %v46_v7 = vld [vmem:[%s697_s0 + $0xf8] sm:$0xff]  ;;  %v29_v8 = vld [vmem:[%s697_s0 + $0x70] sm:$0xff] }
  0x24   :  { %350 = vmatpush1.bf16.msra.mxu0 %v349_v29  ;;  %385 = vmatpush1.bf16.msra.mxu1 %v349_v29  ;;  %v45_v9 = vld [vmem:[%s697_s0 + $0xf0] sm:$0xff]  ;;  %v667_v10 = vld [vmem:[%s699_s2] ss:$0 sm:$0xff] }
  0x25   :  { %351 = vmatprep.subr.bf16.mxu0 %v420_v3  ;;  %372 = vmatprep.subr.bf16.mxu1 %v420_v3 }
  0x28   :  { %353 = vmatpush1.bf16.msra.mxu0 %v352_v32  ;;  %386 = vmatpush1.bf16.msra.mxu1 %v352_v32 }
  0x29   :  { %354 = vmatprep.subr.bf16.mxu0 %v420_v3  ;;  %373 = vmatprep.subr.bf16.mxu1 %v420_v3 }
  0x2c   :  { %356 = vmatpush1.bf16.msra.mxu0 %v355_v35  ;;  %387 = vmatpush1.bf16.msra.mxu1 %v355_v35 }
  0x2d   :  { %357 = vmatprep.subr.bf16.mxu0 %v420_v3  ;;  %374 = vmatprep.subr.bf16.mxu1 %v420_v3 }
  0x30   :  { %359 = vmatpush1.bf16.msra.mxu0 %v358_v38  ;;  %388 = vmatpush1.bf16.msra.mxu1 %v358_v38 }
  0x31   :  { %360 = vmatprep.subr.bf16.mxu0 %v420_v3  ;;  %375 = vmatprep.subr.bf16.mxu1 %v420_v3  ;;  %v44_v3 = vld [vmem:[%s697_s0 + $0xe8] sm:$0xff]  ;;  %s422_s0 = smov [#allocation2]  }
  0x32   :  { %s296_s2 = sshll.u32 %s422_s0, 4  ;;  %s297_s2 = int_to_ptr.vmem [resolvable:$true] %s296_s2 }
  0x33   :  { %s396_s22 = scalar_lea.vmem %s297_s2, 2048  ;;  %p401_p1 = scmp.lt.s32.totalorder %s297_s2, %s297_s2 }
  0x34   :  { %362 = vmatpush1.bf16.msra.mxu0 %v361_v41  ;;  %389 = vmatpush1.bf16.msra.mxu1 %v361_v41  ;;  %p397_p0 = scmp.ne.s32.totalorder %s297_s2, %s396_s22  ;;  %p402_p2 = scmp.lt.s32.totalorder %s396_s22, %s396_s22 }
  0x35   :  { %182 = vmatprep.subr.mxu0 %v421_v42  ;;  %376 = vmatprep.subr.mxu1 %v421_v42 }
  0x36   :  { %p403_p3 = por %p402_p2, %p401_p1 }
  0x38   :  { %183 = vmatpush1.msra.mxu0 %v73_v43  ;;  %390 = vmatpush1.msra.mxu1 %v73_v43  ;;  %p404_p4 = pnand %p403_p3, %p397_p0 }
  0x39   :  { %195 = vmatmul.mubr.f32.vlgmr.msra.gmra.mrb[0].mxu0 %v15_v44  ;;  %235 = vmatmul.mubr.f32.vlgmr.msra.gmra.mrb[0].mxu1 %v31_v45 }
  0x3a   :  { %309 = vmatprep.mubr.msk.f32.mxu0 %vm81_vm0, %v18_v46  ;;  %317 = vmatprep.mubr.msk.f32.mxu1 %vm81_vm0, %v34_v47 }
  0x3d   :  { %200 = vmatmul.mubr.f32.gmra.mrb[2].mxu0 %v17_v48  ;;  %240 = vmatmul.mubr.f32.gmra.mrb[2].mxu1 %v33_v49 }
  0x3e   :  { %310 = vmatprep.mubr.msk.f32.mxu0 %vm81_vm0, %v20_v50  ;;  %318 = vmatprep.mubr.msk.f32.mxu1 %vm81_vm0, %v36_v51 }
  0x41   :  { %205 = vmatmul.mubr.f32.gmra.mrb[4].mxu0 %v19_v52  ;;  %245 = vmatmul.mubr.f32.gmra.mrb[4].mxu1 %v35_v53 }
  0x42   :  { %311 = vmatprep.mubr.msk.f32.mxu0 %vm81_vm0, %v22_v54  ;;  %319 = vmatprep.mubr.msk.f32.mxu1 %vm81_vm0, %v38_v55 }
  0x45   :  { %210 = vmatmul.mubr.f32.gmra.mrb[6].mxu0 %v21_v56  ;;  %250 = vmatmul.mubr.f32.gmra.mrb[6].mxu1 %v37_v57 }
  0x46   :  { %312 = vmatprep.mubr.msk.f32.mxu0 %vm81_vm0, %v24_v58  ;;  %320 = vmatprep.mubr.msk.f32.mxu1 %vm81_vm0, %v40_v59 }
  0x49   :  { %215 = vmatmul.mubr.f32.gmra.mrb[8].mxu0 %v23_v60  ;;  %255 = vmatmul.mubr.f32.gmra.mrb[8].mxu1 %v39_v61 }
  0x4a   :  { %313 = vmatprep.mubr.msk.f32.mxu0 %vm81_vm0, %v26_v62  ;;  %321 = vmatprep.mubr.msk.f32.mxu1 %vm81_vm0, %v42_v63 }
  0x4d   :  { %220 = vmatmul.mubr.f32.gmra.mrb[10].mxu0 %v25_v0  ;;  %260 = vmatmul.mubr.f32.gmra.mrb[10].mxu1 %v41_v1 }
  0x4e   :  { %314 = vmatprep.mubr.msk.f32.mxu0 %vm81_vm0, %v28_v2  ;;  %322 = vmatprep.mubr.msk.f32.mxu1 %vm81_vm0, %v44_v3 }
  0x51   :  { %225 = vmatmul.mubr.f32.gmra.mrb[12].mxu0 %v27_v4  ;;  %265 = vmatmul.mubr.f32.gmra.mrb[12].mxu1 %v43_v5 }
  0x52   :  { %315 = vmatprep.mubr.msk.f32.mxu0 %vm81_vm0, %v30_v6  ;;  %323 = vmatprep.mubr.msk.f32.mxu1 %vm81_vm0, %v46_v7 }
  0x55   :  { %230 = vmatmul.mubr.f32.gmra.mrb[14].mxu0 %v29_v8  ;;  %270 = vmatmul.mubr.f32.gmra.mrb[14].mxu1 %v45_v9 }
 0x10c   :  { %v196_v11 = vpop.f32.mrb[0].mxu0  ;;  %v236_v12 = vpop.f32.mrb[0].mxu1 }
 0x10d   :  { %v197_v13 = vadd.f32 %v667_v10, %v196_v11  ;;  %v237_v14 = vadd.f32 %v667_v10, %v236_v12  ;;  %v198_v15 = vpop.f32.mrb[1].mxu0  ;;  %v238_v16 = vpop.f32.mrb[1].mxu1 }
 0x10f   :  { %275 = vst [vmem:[#allocation2] sm:$0xff] %v197_v13  ;;  %283 = vst [vmem:[#allocation2 + $0x40] sm:$0xff] %v237_v14 }
 0x110   :  { %v201_v17 = vpop.f32.mrb[2].mxu0  ;;  %v241_v18 = vpop.f32.mrb[2].mxu1 }
 0x111   :  { %v202_v19 = vadd.f32 %v667_v10, %v201_v17  ;;  %v242_v20 = vadd.f32 %v667_v10, %v241_v18  ;;  %v203_v21 = vpop.f32.mrb[3].mxu0  ;;  %v243_v22 = vpop.f32.mrb[3].mxu1 }
 0x113   :  { %276 = vst [vmem:[#allocation2 + $0x8] sm:$0xff] %v202_v19  ;;  %284 = vst [vmem:[#allocation2 + $0x48] sm:$0xff] %v242_v20 }
 0x114   :  { %v206_v23 = vpop.f32.mrb[4].mxu0  ;;  %v246_v24 = vpop.f32.mrb[4].mxu1 }
 0x115   :  { %v207_v25 = vadd.f32 %v667_v10, %v206_v23  ;;  %v247_v26 = vadd.f32 %v667_v10, %v246_v24  ;;  %v208_v27 = vpop.f32.mrb[5].mxu0  ;;  %v248_v28 = vpop.f32.mrb[5].mxu1 }
 0x117   :  { %277 = vst [vmem:[#allocation2 + $0x10] sm:$0xff] %v207_v25  ;;  %285 = vst [vmem:[#allocation2 + $0x50] sm:$0xff] %v247_v26 }
 0x118   :  { %v211_v29 = vpop.f32.mrb[6].mxu0  ;;  %v251_v30 = vpop.f32.mrb[6].mxu1 }
 0x119   :  { %v212_v31 = vadd.f32 %v667_v10, %v211_v29  ;;  %v252_v32 = vadd.f32 %v667_v10, %v251_v30  ;;  %v213_v33 = vpop.f32.mrb[7].mxu0  ;;  %v253_v34 = vpop.f32.mrb[7].mxu1 }
 0x11b   :  { %278 = vst [vmem:[#allocation2 + $0x18] sm:$0xff] %v212_v31  ;;  %286 = vst [vmem:[#allocation2 + $0x58] sm:$0xff] %v252_v32 }
 0x11c   :  { %v216_v35 = vpop.f32.mrb[8].mxu0  ;;  %v256_v36 = vpop.f32.mrb[8].mxu1 }
 0x11d   :  { %v217_v37 = vadd.f32 %v667_v10, %v216_v35  ;;  %v257_v38 = vadd.f32 %v667_v10, %v256_v36  ;;  %v218_v39 = vpop.f32.mrb[9].mxu0  ;;  %v258_v40 = vpop.f32.mrb[9].mxu1 }
 0x11f   :  { %279 = vst [vmem:[#allocation2 + $0x20] sm:$0xff] %v217_v37  ;;  %287 = vst [vmem:[#allocation2 + $0x60] sm:$0xff] %v257_v38 }
 0x120   :  { %v221_v41 = vpop.f32.mrb[10].mxu0  ;;  %v261_v42 = vpop.f32.mrb[10].mxu1 }
 0x121   :  { %v222_v43 = vadd.f32 %v667_v10, %v221_v41  ;;  %v262_v44 = vadd.f32 %v667_v10, %v261_v42  ;;  %v223_v45 = vpop.f32.mrb[11].mxu0  ;;  %v263_v46 = vpop.f32.mrb[11].mxu1 }
 0x123   :  { %280 = vst [vmem:[#allocation2 + $0x28] sm:$0xff] %v222_v43  ;;  %288 = vst [vmem:[#allocation2 + $0x68] sm:$0xff] %v262_v44 }
 0x124   :  { %v226_v47 = vpop.f32.mrb[12].mxu0  ;;  %v266_v48 = vpop.f32.mrb[12].mxu1 }
 0x125   :  { %v227_v49 = vadd.f32 %v667_v10, %v226_v47  ;;  %v267_v50 = vadd.f32 %v667_v10, %v266_v48  ;;  %v228_v51 = vpop.f32.mrb[13].mxu0  ;;  %v268_v52 = vpop.f32.mrb[13].mxu1 }
 0x127   :  { %281 = vst [vmem:[#allocation2 + $0x30] sm:$0xff] %v227_v49  ;;  %289 = vst [vmem:[#allocation2 + $0x70] sm:$0xff] %v267_v50 }
 0x128   :  { %v231_v53 = vpop.f32.mrb[14].mxu0  ;;  %v271_v54 = vpop.f32.mrb[14].mxu1 }
 0x129   :  { %v232_v55 = vadd.f32 %v667_v10, %v231_v53  ;;  %v272_v56 = vadd.f32 %v667_v10, %v271_v54  ;;  %v233_v57 = vpop.f32.mrb[15].mxu0  ;;  %v273_v58 = vpop.f32.mrb[15].mxu1 }
 0x12b   :  { %282 = vst [vmem:[#allocation2 + $0x38] sm:$0xff] %v232_v55  ;;  %290 = vst [vmem:[#allocation2 + $0x78] sm:$0xff] %v272_v56 }
 0x12c   :  { %407 = shalt.err (!%p404_p4)
}
 0x12d   :  { %s408_s24 = scalar_lea.hbm %s700_s3, 2048 }
 0x12e   :  { %p409_p5 = scmp.ne.s32.totalorder %s700_s3, %s408_s24  ;;  %p412_p6 = scmp.lt.u32.totalorder %s408_s24, %s700_s3 }
 0x130   :  { %p414_p7 = pnand %p412_p6, %p409_p5 }
 0x132   :  { %417 = shalt.err (!%p414_p7)
}
 0x133   :  { %s423_s29 = smov 128   ;;  %s424_s30 = smov 8  }
 0x134   :  { %302 = dma.vmem_to_hbm [thread:$0]  %s297_s2, 2048, %s700_s3, [#allocation3], %s423_s29, %s423_s29, %s424_s30  }
 0x135   :  { %418 = dma.done.wait [#allocation3], 2048  }
 0x136   :  { %419 = vsyncadd [#allocation3], 4294965248 }
 0x137   :  { %306 = vsyncpa [#allocation3], 1 }

</bundles_post_ra>
